<compile_context>
chip_gen: v7x
topology: tpu7x:2x2x1
jax: 0.10.0
libtpu: 0.0.40
codegen_flags: <defaults>
</compile_context>

<pallas_src>
import numpy as np
import jax
import jax.numpy as jnp
from jax.experimental import pallas as pl
from jax.experimental.pallas import tpu as pltpu

# ----- model hyper-parameters (small, consistent with the module) -----
D_MODEL = 32
D_INNER = 64
N_HEAD = 2
D_K = 16
D_V = 16
EPS = 1e-5          # PyTorch LayerNorm default
NEG_INF = -1e30     # finite fill: robust for fully-masked rows (no NaN)


def _layer_norm(x, gamma, beta):
    mu = jnp.mean(x, axis=-1, keepdims=True)
    var = jnp.mean((x - mu) ** 2, axis=-1, keepdims=True)  # biased, like torch
    return (x - mu) * jax.lax.rsqrt(var + EPS) * gamma + beta


def decoder_layer_kernel(
    # activations / masks
    dec_ref,      # (B*Lq, D)        bf16
    enc_ref,      # (B*Lk, D)        bf16
    bias_ref,     # (B, Lq, Lk)      f32 additive mask (0 or NEG_INF)
    npm_ref,      # (B*Lq, 1)        f32 non-pad mask
    # per-head stacked, pre-transposed weights
    wq_ref,       # (H, D, D_K)      bf16
    wk_ref,       # (H, D, D_K)      bf16
    wv_ref,       # (H, D, D_V)      bf16
    wfc_ref,      # (H, D_V, D)      bf16
    bqkv_ref,     # (H, 3, D_K)      f32  rows: [bq_h, bk_h, bv_h]
    # FFN weights (pre-transposed) + packed vectors
    w1_ref,       # (D, D_INNER)     bf16
    w2_ref,       # (D_INNER, D)     bf16
    vec_ref,      # (7, D_INNER)     f32  rows: [bfc, g1, be1, b1, b2, g2, be2]
    # outputs
    out_ref,      # (B*Lq, D)        f32
    attn_ref,     # (H, B, Lq, Lk)   f32
):
    B, Lq, Lk = bias_ref.shape

    dec_bf = dec_ref[...]                        # bf16 operands for the MXU
    enc_bf = enc_ref[...]
    residual = dec_bf.astype(jnp.float32)
    npm = npm_ref[...]                           # (B*Lq, 1)
    npm3 = npm.reshape(B, Lq, 1)
    bias = bias_ref[...]                         # additive attention mask

    inv_temp = jnp.float32(1.0 / np.sqrt(D_K))
    acc = jnp.zeros((B * Lq, D_MODEL), jnp.float32)

    # Static head unroll; no lane slicing / concat: per-head weights are
    # indexed on their leading axis and the fc projection is accumulated.
    for h in range(N_HEAD):
        bqkv_h = bqkv_ref[h]                     # (3, D_K)
        qh = jnp.dot(dec_bf, wq_ref[h], preferred_element_type=jnp.float32) + bqkv_h[0:1, :]
        kh = jnp.dot(enc_bf, wk_ref[h], preferred_element_type=jnp.float32) + bqkv_h[1:2, :]
        vh = jnp.dot(enc_bf, wv_ref[h], preferred_element_type=jnp.float32) + bqkv_h[2:3, :]

        qh3 = qh.reshape(B, Lq, D_K).astype(jnp.bfloat16)
        kh3 = kh.reshape(B, Lk, D_K).astype(jnp.bfloat16)
        vh3 = vh.reshape(B, Lk, D_V).astype(jnp.bfloat16)

        s = jnp.einsum('bqd,bkd->bqk', qh3, kh3,
                       preferred_element_type=jnp.float32) * inv_temp + bias
        m = jnp.max(s, axis=-1, keepdims=True)
        e = jnp.exp(s - m)
        p = e * pl.reciprocal(jnp.sum(e, axis=-1, keepdims=True), approx=True)

        # returned attention copy: scaled by non-pad mask (torch semantics)
        attn_ref[h] = p * npm3

        ctx = jnp.einsum('bqk,bkd->bqd', p.astype(jnp.bfloat16), vh3,
                         preferred_element_type=jnp.float32)       # (B, Lq, D_V)
        acc = acc + jnp.dot(ctx.reshape(B * Lq, D_V).astype(jnp.bfloat16),
                            wfc_ref[h], preferred_element_type=jnp.float32)

    vecs = vec_ref[...]
    bfc = vecs[0:1, :D_MODEL]
    g1, be1 = vecs[1:2, :D_MODEL], vecs[2:3, :D_MODEL]
    b1 = vecs[3:4, :]
    b2 = vecs[4:5, :D_MODEL]
    g2, be2 = vecs[5:6, :D_MODEL], vecs[6:7, :D_MODEL]

    # MHA epilogue: fc bias, residual, LayerNorm, non-pad mask
    mha = _layer_norm(acc + bfc + residual, g1, be1) * npm

    # Position-wise FFN (Conv1d kernel-size-1 == Linear)
    h1 = jnp.maximum(jnp.dot(mha.astype(jnp.bfloat16), w1_ref[...],
                             preferred_element_type=jnp.float32) + b1, 0.0)
    h2 = jnp.dot(h1.astype(jnp.bfloat16), w2_ref[...],
                 preferred_element_type=jnp.float32) + b2
    out_ref[...] = _layer_norm(h2 + mha, g2, be2) * npm


def decoder_layer(dec_input, enc_input, non_pad_mask, co_attn_mask, params):
    """Returns (dec_output (B,Lq,D), dec_co_attn (H*B,Lq,Lk))."""
    (wq, bq, wk, bk, wv, bv, wfc, bfc, g1, be1, w1, b1, w2, b2, g2, be2) = params
    bsz, Lq, _ = dec_input.shape
    Lk = enc_input.shape[1]

    # ---------------- host-side layout plumbing (free) ----------------
    dec2 = dec_input.reshape(bsz * Lq, D_MODEL).astype(jnp.bfloat16)
    enc2 = enc_input.reshape(bsz * Lk, D_MODEL).astype(jnp.bfloat16)
    bias = jnp.where(co_attn_mask, NEG_INF, 0.0).astype(jnp.float32)
    npm2 = non_pad_mask.astype(jnp.float32).reshape(bsz * Lq, 1)

    # per-head stacked, pre-transposed projection weights: (H, D_in, D_out)
    wq_h = wq.reshape(N_HEAD, D_K, D_MODEL).transpose(0, 2, 1).astype(jnp.bfloat16)
    wk_h = wk.reshape(N_HEAD, D_K, D_MODEL).transpose(0, 2, 1).astype(jnp.bfloat16)
    wv_h = wv.reshape(N_HEAD, D_V, D_MODEL).transpose(0, 2, 1).astype(jnp.bfloat16)
    wfc_h = wfc.T.reshape(N_HEAD, D_V, D_MODEL).astype(jnp.bfloat16)
    w1_t = w1.T.astype(jnp.bfloat16)
    w2_t = w2.T.astype(jnp.bfloat16)

    # packed per-head projection biases (D_K == D_V here)
    bqkv = jnp.stack([bq.reshape(N_HEAD, D_K),
                      bk.reshape(N_HEAD, D_K),
                      bv.reshape(N_HEAD, D_V)], axis=1).astype(jnp.float32)

    def pad_row(v):
        v = v.reshape(1, -1).astype(jnp.float32)
        return jnp.pad(v, ((0, 0), (0, D_INNER - v.shape[1])))

    vec = jnp.concatenate([pad_row(bfc), pad_row(g1), pad_row(be1),
                           pad_row(b1), pad_row(b2), pad_row(g2), pad_row(be2)],
                          axis=0)                                   # (7, D_INNER)

    inputs = (dec2, enc2, bias, npm2, wq_h, wk_h, wv_h, wfc_h, bqkv, w1_t, w2_t, vec)

    def full_spec(shape):
        n = len(shape)
        return pl.BlockSpec(shape, lambda i, _n=n: (0,) * _n)

    out_shapes = (jax.ShapeDtypeStruct((bsz * Lq, D_MODEL), jnp.float32),
                  jax.ShapeDtypeStruct((N_HEAD, bsz, Lq, Lk), jnp.float32))
    out_specs = (full_spec((bsz * Lq, D_MODEL)),
                 full_spec((N_HEAD, bsz, Lq, Lk)))

    out2, attn4 = pl.pallas_call(
        decoder_layer_kernel,
        out_shape=out_shapes,
        grid=(1,),                                   # whole batch, one grid step
        in_specs=[full_spec(tuple(np.shape(x))) for x in inputs],
        out_specs=out_specs,
        compiler_params=pltpu.CompilerParams(dimension_semantics=("arbitrary",)),
    )(*inputs)

    dec_out = out2.reshape(bsz, Lq, D_MODEL)
    # torch layout: (n_head * bsz, Lq, Lk) with head-major flattening
    dec_co_attn = attn4.reshape(N_HEAD * bsz, Lq, Lk)
    return dec_out, dec_co_attn


# ----------------- pure-JAX reference (for verification) -----------------
def decoder_layer_ref(dec_input, enc_input, non_pad_mask, co_attn_mask, params):
    (wq, bq, wk, bk, wv, bv, wfc, bfc, g1, be1, w1, b1, w2, b2, g2, be2) = params
    bsz, Lq, _ = dec_input.shape
    Lk = enc_input.shape[1]
    npm = non_pad_mask.astype(jnp.float32)

    Q = (dec_input @ wq.T + bq).reshape(bsz, Lq, N_HEAD, D_K)
    K = (enc_input @ wk.T + bk).reshape(bsz, Lk, N_HEAD, D_K)
    V = (enc_input @ wv.T + bv).reshape(bsz, Lk, N_HEAD, D_V)
    Q = Q.transpose(2, 0, 1, 3).reshape(-1, Lq, D_K)
    K = K.transpose(2, 0, 1, 3).reshape(-1, Lk, D_K)
    V = V.transpose(2, 0, 1, 3).reshape(-1, Lk, D_V)
    mask = jnp.tile(co_attn_mask, (N_HEAD, 1, 1))

    attn = jnp.einsum('bqd,bkd->bqk', Q, K) / np.sqrt(D_K)
    attn = jnp.where(mask, NEG_INF, attn)     # same finite fill as the kernel
    attn = jax.nn.softmax(attn, axis=2)
    attn2 = attn * jnp.tile(npm, (N_HEAD, 1, 1))
    out = jnp.einsum('bqk,bkd->bqd', attn, V)
    out = out.reshape(N_HEAD, bsz, Lq, D_V).transpose(1, 2, 0, 3).reshape(bsz, Lq, -1)
    out = out @ wfc.T + bfc
    out = _layer_norm(out + dec_input, g1, be1)
    out = out * npm

    h1 = jnp.maximum(out @ w1.T + b1, 0.0)
    h2 = h1 @ w2.T + b2
    ffn = _layer_norm(h2 + out, g2, be2) * npm
    return ffn, attn2


def make_params(key):
    ks = jax.random.split(key, 12)
    s_qk = np.sqrt(2.0 / (D_MODEL + D_K))
    s_v = np.sqrt(2.0 / (D_MODEL + D_V))
    wq = jax.random.normal(ks[0], (N_HEAD * D_K, D_MODEL), jnp.float32) * s_qk
    wk = jax.random.normal(ks[1], (N_HEAD * D_K, D_MODEL), jnp.float32) * s_qk
    wv = jax.random.normal(ks[2], (N_HEAD * D_V, D_MODEL), jnp.float32) * s_v
    wfc = jax.random.normal(ks[3], (D_MODEL, N_HEAD * D_V), jnp.float32) * np.sqrt(
        2.0 / (D_MODEL + N_HEAD * D_V))
    w1 = jax.random.normal(ks[4], (D_INNER, D_MODEL), jnp.float32) * 0.1
    w2 = jax.random.normal(ks[5], (D_MODEL, D_INNER), jnp.float32) * 0.1
    bq = jax.random.normal(ks[6], (1, N_HEAD * D_K), jnp.float32) * 0.02
    bk = jax.random.normal(ks[7], (1, N_HEAD * D_K), jnp.float32) * 0.02
    bv = jax.random.normal(ks[8], (1, N_HEAD * D_V), jnp.float32) * 0.02
    bfc = jax.random.normal(ks[9], (1, D_MODEL), jnp.float32) * 0.02
    b1 = jax.random.normal(ks[10], (1, D_INNER), jnp.float32) * 0.02
    b2 = jax.random.normal(ks[11], (1, D_MODEL), jnp.float32) * 0.02
    g1 = jnp.ones((1, D_MODEL), jnp.float32)
    be1 = jnp.zeros((1, D_MODEL), jnp.float32)
    g2 = jnp.ones((1, D_MODEL), jnp.float32)
    be2 = jnp.zeros((1, D_MODEL), jnp.float32)
    return (wq, bq, wk, bk, wv, bv, wfc, bfc, g1, be1, w1, b1, w2, b2, g2, be2)


if __name__ == "__main__":
    bsz, Lq, Lk = 2, 8, 8
    key = jax.random.PRNGKey(0)
    k0, k1, k2, kp = jax.random.split(key, 4)

    dec_input = jax.random.normal(k0, (bsz, Lq, D_MODEL), jnp.float32)
    enc_input = jax.random.normal(k1, (bsz, Lk, D_MODEL), jnp.float32)
    co_attn_mask = jax.random.bernoulli(k2, 0.3, (bsz, Lq, Lk))
    co_attn_mask = co_attn_mask.at[:, :, 0].set(False)  # keep rows non-degenerate
    non_pad_mask = jnp.concatenate(
        [jnp.ones((bsz, Lq - 2, 1)), jnp.zeros((bsz, 2, 1))], axis=1
    ).astype(jnp.float32)

    params = make_params(kp)

    dec_out, dec_co_attn = decoder_layer(
        dec_input, enc_input, non_pad_mask, co_attn_mask, params)
    jax.block_until_ready((dec_out, dec_co_attn))

    ref_out, ref_attn = decoder_layer_ref(
        dec_input, enc_input, non_pad_mask, co_attn_mask, params)

    # bf16 matmul operands (f32 accumulation) => ~1% relative error budget.
    np.testing.assert_allclose(np.asarray(dec_out), np.asarray(ref_out),
                               rtol=5e-2, atol=5e-2)
    np.testing.assert_allclose(np.asarray(dec_co_attn), np.asarray(ref_attn),
                               rtol=5e-2, atol=5e-2)

    print("KERNEL_OK")
</pallas_src>

<mosaic_0001>
module attributes {stable_mosaic.version = 11 : i64} {
  func.func @decoder_layer_kernel(%arg0: i32, %arg1: memref<16x32xbf16, #tpu.memory_space<vmem>>, %arg2: memref<16x32xbf16, #tpu.memory_space<vmem>>, %arg3: memref<2x8x8xf32, #tpu.memory_space<vmem>>, %arg4: memref<16x1xf32, #tpu.memory_space<vmem>>, %arg5: memref<2x32x16xbf16, #tpu.memory_space<vmem>>, %arg6: memref<2x32x16xbf16, #tpu.memory_space<vmem>>, %arg7: memref<2x32x16xbf16, #tpu.memory_space<vmem>>, %arg8: memref<2x16x32xbf16, #tpu.memory_space<vmem>>, %arg9: memref<2x3x16xf32, #tpu.memory_space<vmem>>, %arg10: memref<32x64xbf16, #tpu.memory_space<vmem>>, %arg11: memref<64x32xbf16, #tpu.memory_space<vmem>>, %arg12: memref<7x64xf32, #tpu.memory_space<vmem>>, %arg13: memref<16x32xf32, #tpu.memory_space<vmem>>, %arg14: memref<2x2x8x8xf32, #tpu.memory_space<vmem>>) attributes {dimension_semantics = [#tpu.dimension_semantics<arbitrary>], iteration_bounds = array<i64: 1>, scalar_prefetch = 0 : i64, scratch_operands = 0 : i64, tpu.core_type = #tpu.core_type<tc>, window_params = [{pipeline_mode = #tpu.pipeline_mode<synchronous>, transform_indices = @transform_0, window_bounds = array<i64: 16, 32>}, {pipeline_mode = #tpu.pipeline_mode<synchronous>, transform_indices = @transform_1, window_bounds = array<i64: 16, 32>}, {pipeline_mode = #tpu.pipeline_mode<synchronous>, transform_indices = @transform_2, window_bounds = array<i64: 2, 8, 8>}, {pipeline_mode = #tpu.pipeline_mode<synchronous>, transform_indices = @transform_3, window_bounds = array<i64: 16, 1>}, {pipeline_mode = #tpu.pipeline_mode<synchronous>, transform_indices = @transform_4, window_bounds = array<i64: 2, 32, 16>}, {pipeline_mode = #tpu.pipeline_mode<synchronous>, transform_indices = @transform_5, window_bounds = array<i64: 2, 32, 16>}, {pipeline_mode = #tpu.pipeline_mode<synchronous>, transform_indices = @transform_6, window_bounds = array<i64: 2, 32, 16>}, {pipeline_mode = #tpu.pipeline_mode<synchronous>, transform_indices = @transform_7, window_bounds = array<i64: 2, 16, 32>}, {pipeline_mode = #tpu.pipeline_mode<synchronous>, transform_indices = @transform_8, window_bounds = array<i64: 2, 3, 16>}, {pipeline_mode = #tpu.pipeline_mode<synchronous>, transform_indices = @transform_9, window_bounds = array<i64: 32, 64>}, {pipeline_mode = #tpu.pipeline_mode<synchronous>, transform_indices = @transform_10, window_bounds = array<i64: 64, 32>}, {pipeline_mode = #tpu.pipeline_mode<synchronous>, transform_indices = @transform_11, window_bounds = array<i64: 7, 64>}, {pipeline_mode = #tpu.pipeline_mode<synchronous>, transform_indices = @transform_12, window_bounds = array<i64: 16, 32>}, {pipeline_mode = #tpu.pipeline_mode<synchronous>, transform_indices = @transform_13, window_bounds = array<i64: 2, 2, 8, 8>}]} {
    %c0 = arith.constant 0 : index
    %c0_0 = arith.constant 0 : index
    %0 = vector.load %arg1[%c0, %c0_0] : memref<16x32xbf16, #tpu.memory_space<vmem>>, vector<16x32xbf16>
    %c0_1 = arith.constant 0 : index
    %c0_2 = arith.constant 0 : index
    %1 = vector.load %arg2[%c0_1, %c0_2] : memref<16x32xbf16, #tpu.memory_space<vmem>>, vector<16x32xbf16>
    %2 = arith.extf %0 : vector<16x32xbf16> to vector<16x32xf32>
    %c0_3 = arith.constant 0 : index
    %c0_4 = arith.constant 0 : index
    %3 = vector.load %arg4[%c0_3, %c0_4] : memref<16x1xf32, #tpu.memory_space<vmem>>, vector<16x1xf32>
    %4 = vector.shape_cast %3 : vector<16x1xf32> to vector<2x8x1xf32>
    %c0_5 = arith.constant 0 : index
    %c0_6 = arith.constant 0 : index
    %c0_7 = arith.constant 0 : index
    %5 = vector.load %arg3[%c0_5, %c0_6, %c0_7] : memref<2x8x8xf32, #tpu.memory_space<vmem>>, vector<2x8x8xf32>
    %cst = arith.constant 0.000000e+00 : f32
    %6 = vector.broadcast %cst : f32 to vector<16x32xf32>
    %c0_8 = arith.constant 0 : index
    %c0_9 = arith.constant 0 : index
    %c0_10 = arith.constant 0 : index
    %7 = vector.load %arg9[%c0_8, %c0_9, %c0_10] : memref<2x3x16xf32, #tpu.memory_space<vmem>>, vector<1x3x16xf32>
    %8 = vector.shape_cast %7 : vector<1x3x16xf32> to vector<3x16xf32>
    %c0_11 = arith.constant 0 : index
    %c0_12 = arith.constant 0 : index
    %c0_13 = arith.constant 0 : index
    %9 = vector.load %arg5[%c0_11, %c0_12, %c0_13] : memref<2x32x16xbf16, #tpu.memory_space<vmem>>, vector<1x32x16xbf16>
    %10 = vector.shape_cast %9 : vector<1x32x16xbf16> to vector<32x16xbf16>
    %cst_14 = arith.constant dense<0.000000e+00> : vector<16x16xf32>
    %11 = tpu.matmul %0, %10, %cst_14 {dimension_numbers = #tpu.dot_dimension_numbers<[1], [0], [0], [1], [0, 0, 1, 1], [], []>} : vector<16x32xbf16>, vector<32x16xbf16>, vector<16x16xf32> -> vector<16x16xf32>
    %12 = vector.extract_strided_slice %8 {offsets = [0, 0], sizes = [1, 16], strides = [1, 1]} : vector<3x16xf32> to vector<1x16xf32>
    %13 = vector.broadcast %12 : vector<1x16xf32> to vector<16x16xf32>
    %14 = arith.addf %11, %13 : vector<16x16xf32>
    %c0_15 = arith.constant 0 : index
    %c0_16 = arith.constant 0 : index
    %c0_17 = arith.constant 0 : index
    %15 = vector.load %arg6[%c0_15, %c0_16, %c0_17] : memref<2x32x16xbf16, #tpu.memory_space<vmem>>, vector<1x32x16xbf16>
    %16 = vector.shape_cast %15 : vector<1x32x16xbf16> to vector<32x16xbf16>
    %cst_18 = arith.constant dense<0.000000e+00> : vector<16x16xf32>
    %17 = tpu.matmul %1, %16, %cst_18 {dimension_numbers = #tpu.dot_dimension_numbers<[1], [0], [0], [1], [0, 0, 1, 1], [], []>} : vector<16x32xbf16>, vector<32x16xbf16>, vector<16x16xf32> -> vector<16x16xf32>
    %18 = vector.extract_strided_slice %8 {offsets = [1, 0], sizes = [1, 16], strides = [1, 1]} : vector<3x16xf32> to vector<1x16xf32>
    %19 = vector.broadcast %18 : vector<1x16xf32> to vector<16x16xf32>
    %20 = arith.addf %17, %19 : vector<16x16xf32>
    %c0_19 = arith.constant 0 : index
    %c0_20 = arith.constant 0 : index
    %c0_21 = arith.constant 0 : index
    %21 = vector.load %arg7[%c0_19, %c0_20, %c0_21] : memref<2x32x16xbf16, #tpu.memory_space<vmem>>, vector<1x32x16xbf16>
    %22 = vector.shape_cast %21 : vector<1x32x16xbf16> to vector<32x16xbf16>
    %cst_22 = arith.constant dense<0.000000e+00> : vector<16x16xf32>
    %23 = tpu.matmul %1, %22, %cst_22 {dimension_numbers = #tpu.dot_dimension_numbers<[1], [0], [0], [1], [0, 0, 1, 1], [], []>} : vector<16x32xbf16>, vector<32x16xbf16>, vector<16x16xf32> -> vector<16x16xf32>
    %24 = vector.extract_strided_slice %8 {offsets = [2, 0], sizes = [1, 16], strides = [1, 1]} : vector<3x16xf32> to vector<1x16xf32>
    %25 = vector.broadcast %24 : vector<1x16xf32> to vector<16x16xf32>
    %26 = arith.addf %23, %25 : vector<16x16xf32>
    %27 = vector.shape_cast %14 : vector<16x16xf32> to vector<2x8x16xf32>
    %28 = arith.truncf %27 : vector<2x8x16xf32> to vector<2x8x16xbf16>
    %29 = vector.shape_cast %20 : vector<16x16xf32> to vector<2x8x16xf32>
    %30 = arith.truncf %29 : vector<2x8x16xf32> to vector<2x8x16xbf16>
    %31 = vector.shape_cast %26 : vector<16x16xf32> to vector<2x8x16xf32>
    %32 = arith.truncf %31 : vector<2x8x16xf32> to vector<2x8x16xbf16>
    "tpu.trace_start"() <{level = 10 : i32, message = "bqd,bkd->bqk"}> : () -> ()
    %cst_23 = arith.constant dense<0.000000e+00> : vector<2x8x8xf32>
    %33 = tpu.matmul %28, %30, %cst_23 {dimension_numbers = #tpu.dot_dimension_numbers<[2], [2], [1], [1], [0, 0, 0, 1, 1, 1], [0], [0]>} : vector<2x8x16xbf16>, vector<2x8x16xbf16>, vector<2x8x8xf32> -> vector<2x8x8xf32>
    "tpu.trace_stop"() : () -> ()
    %cst_24 = arith.constant 2.500000e-01 : f32
    %34 = vector.broadcast %cst_24 : f32 to vector<2x8x8xf32>
    %35 = arith.mulf %33, %34 : vector<2x8x8xf32>
    %36 = arith.addf %35, %5 : vector<2x8x8xf32>
    %cst_25 = arith.constant dense<0xFF800000> : vector<2x8xf32>
    %37 = vector.multi_reduction <maximumf>, %36, %cst_25 [2] : vector<2x8x8xf32> to vector<2x8xf32>
    %38 = vector.shape_cast %37 : vector<2x8xf32> to vector<2x8x1xf32>
    %39 = vector.broadcast %38 : vector<2x8x1xf32> to vector<2x8x8xf32>
    %40 = arith.subf %36, %39 : vector<2x8x8xf32>
    %41 = math.exp %40 : vector<2x8x8xf32>
    %cst_26 = arith.constant dense<0.000000e+00> : vector<2x8xf32>
    %42 = vector.multi_reduction <add>, %41, %cst_26 [2] : vector<2x8x8xf32> to vector<2x8xf32>
    %43 = vector.shape_cast %42 : vector<2x8xf32> to vector<2x8x1xf32>
    %44 = tpu.reciprocal %43 {approx = true} : vector<2x8x1xf32> -> vector<2x8x1xf32>
    %45 = vector.broadcast %44 : vector<2x8x1xf32> to vector<2x8x8xf32>
    %46 = arith.mulf %41, %45 : vector<2x8x8xf32>
    %47 = vector.broadcast %4 : vector<2x8x1xf32> to vector<2x8x8xf32>
    %48 = arith.mulf %46, %47 : vector<2x8x8xf32>
    %c0_27 = arith.constant 0 : index
    %c0_28 = arith.constant 0 : index
    %c0_29 = arith.constant 0 : index
    %c0_30 = arith.constant 0 : index
    %49 = vector.load %arg14[%c0_27, %c0_28, %c0_29, %c0_30] : memref<2x2x8x8xf32, #tpu.memory_space<vmem>>, vector<1x2x8x8xf32>
    %50 = vector.shape_cast %49 : vector<1x2x8x8xf32> to vector<2x8x8xf32>
    %51 = vector.shape_cast %48 : vector<2x8x8xf32> to vector<1x2x8x8xf32>
    tpu.vector_store %arg14[%c0_27, %c0_28, %c0_29, %c0_30], %51 {strides = array<i32>} : memref<2x2x8x8xf32, #tpu.memory_space<vmem>>, vector<1x2x8x8xf32>,
    %52 = arith.truncf %46 : vector<2x8x8xf32> to vector<2x8x8xbf16>
    "tpu.trace_start"() <{level = 10 : i32, message = "bqk,bkd->bqd"}> : () -> ()
    %cst_31 = arith.constant dense<0.000000e+00> : vector<2x8x16xf32>
    %53 = tpu.matmul %52, %32, %cst_31 {dimension_numbers = #tpu.dot_dimension_numbers<[2], [1], [1], [2], [0, 0, 0, 1, 1, 2], [0], [0]>} : vector<2x8x8xbf16>, vector<2x8x16xbf16>, vector<2x8x16xf32> -> vector<2x8x16xf32>
    "tpu.trace_stop"() : () -> ()
    %54 = vector.shape_cast %53 : vector<2x8x16xf32> to vector<16x16xf32>
    %55 = arith.truncf %54 : vector<16x16xf32> to vector<16x16xbf16>
    %c0_32 = arith.constant 0 : index
    %c0_33 = arith.constant 0 : index
    %c0_34 = arith.constant 0 : index
    %56 = vector.load %arg8[%c0_32, %c0_33, %c0_34] : memref<2x16x32xbf16, #tpu.memory_space<vmem>>, vector<1x16x32xbf16>
    %57 = vector.shape_cast %56 : vector<1x16x32xbf16> to vector<16x32xbf16>
    %cst_35 = arith.constant dense<0.000000e+00> : vector<16x32xf32>
    %58 = tpu.matmul %55, %57, %cst_35 {dimension_numbers = #tpu.dot_dimension_numbers<[1], [0], [0], [1], [0, 0, 1, 1], [], []>} : vector<16x16xbf16>, vector<16x32xbf16>, vector<16x32xf32> -> vector<16x32xf32>
    %59 = arith.addf %6, %58 : vector<16x32xf32>
    %c1 = arith.constant 1 : index
    %c0_36 = arith.constant 0 : index
    %c0_37 = arith.constant 0 : index
    %60 = vector.load %arg9[%c1, %c0_36, %c0_37] : memref<2x3x16xf32, #tpu.memory_space<vmem>>, vector<1x3x16xf32>
    %61 = vector.shape_cast %60 : vector<1x3x16xf32> to vector<3x16xf32>
    %c1_38 = arith.constant 1 : index
    %c0_39 = arith.constant 0 : index
    %c0_40 = arith.constant 0 : index
    %62 = vector.load %arg5[%c1_38, %c0_39, %c0_40] : memref<2x32x16xbf16, #tpu.memory_space<vmem>>, vector<1x32x16xbf16>
    %63 = vector.shape_cast %62 : vector<1x32x16xbf16> to vector<32x16xbf16>
    %cst_41 = arith.constant dense<0.000000e+00> : vector<16x16xf32>
    %64 = tpu.matmul %0, %63, %cst_41 {dimension_numbers = #tpu.dot_dimension_numbers<[1], [0], [0], [1], [0, 0, 1, 1], [], []>} : vector<16x32xbf16>, vector<32x16xbf16>, vector<16x16xf32> -> vector<16x16xf32>
    %65 = vector.extract_strided_slice %61 {offsets = [0, 0], sizes = [1, 16], strides = [1, 1]} : vector<3x16xf32> to vector<1x16xf32>
    %66 = vector.broadcast %65 : vector<1x16xf32> to vector<16x16xf32>
    %67 = arith.addf %64, %66 : vector<16x16xf32>
    %c1_42 = arith.constant 1 : index
    %c0_43 = arith.constant 0 : index
    %c0_44 = arith.constant 0 : index
    %68 = vector.load %arg6[%c1_42, %c0_43, %c0_44] : memref<2x32x16xbf16, #tpu.memory_space<vmem>>, vector<1x32x16xbf16>
    %69 = vector.shape_cast %68 : vector<1x32x16xbf16> to vector<32x16xbf16>
    %cst_45 = arith.constant dense<0.000000e+00> : vector<16x16xf32>
    %70 = tpu.matmul %1, %69, %cst_45 {dimension_numbers = #tpu.dot_dimension_numbers<[1], [0], [0], [1], [0, 0, 1, 1], [], []>} : vector<16x32xbf16>, vector<32x16xbf16>, vector<16x16xf32> -> vector<16x16xf32>
    %71 = vector.extract_strided_slice %61 {offsets = [1, 0], sizes = [1, 16], strides = [1, 1]} : vector<3x16xf32> to vector<1x16xf32>
    %72 = vector.broadcast %71 : vector<1x16xf32> to vector<16x16xf32>
    %73 = arith.addf %70, %72 : vector<16x16xf32>
    %c1_46 = arith.constant 1 : index
    %c0_47 = arith.constant 0 : index
    %c0_48 = arith.constant 0 : index
    %74 = vector.load %arg7[%c1_46, %c0_47, %c0_48] : memref<2x32x16xbf16, #tpu.memory_space<vmem>>, vector<1x32x16xbf16>
    %75 = vector.shape_cast %74 : vector<1x32x16xbf16> to vector<32x16xbf16>
    %cst_49 = arith.constant dense<0.000000e+00> : vector<16x16xf32>
    %76 = tpu.matmul %1, %75, %cst_49 {dimension_numbers = #tpu.dot_dimension_numbers<[1], [0], [0], [1], [0, 0, 1, 1], [], []>} : vector<16x32xbf16>, vector<32x16xbf16>, vector<16x16xf32> -> vector<16x16xf32>
    %77 = vector.extract_strided_slice %61 {offsets = [2, 0], sizes = [1, 16], strides = [1, 1]} : vector<3x16xf32> to vector<1x16xf32>
    %78 = vector.broadcast %77 : vector<1x16xf32> to vector<16x16xf32>
    %79 = arith.addf %76, %78 : vector<16x16xf32>
    %80 = vector.shape_cast %67 : vector<16x16xf32> to vector<2x8x16xf32>
    %81 = arith.truncf %80 : vector<2x8x16xf32> to vector<2x8x16xbf16>
    %82 = vector.shape_cast %73 : vector<16x16xf32> to vector<2x8x16xf32>
    %83 = arith.truncf %82 : vector<2x8x16xf32> to vector<2x8x16xbf16>
    %84 = vector.shape_cast %79 : vector<16x16xf32> to vector<2x8x16xf32>
    %85 = arith.truncf %84 : vector<2x8x16xf32> to vector<2x8x16xbf16>
    "tpu.trace_start"() <{level = 10 : i32, message = "bqd,bkd->bqk"}> : () -> ()
    %cst_50 = arith.constant dense<0.000000e+00> : vector<2x8x8xf32>
    %86 = tpu.matmul %81, %83, %cst_50 {dimension_numbers = #tpu.dot_dimension_numbers<[2], [2], [1], [1], [0, 0, 0, 1, 1, 1], [0], [0]>} : vector<2x8x16xbf16>, vector<2x8x16xbf16>, vector<2x8x8xf32> -> vector<2x8x8xf32>
    "tpu.trace_stop"() : () -> ()
    %cst_51 = arith.constant 2.500000e-01 : f32
    %87 = vector.broadcast %cst_51 : f32 to vector<2x8x8xf32>
    %88 = arith.mulf %86, %87 : vector<2x8x8xf32>
    %89 = arith.addf %88, %5 : vector<2x8x8xf32>
    %cst_52 = arith.constant dense<0xFF800000> : vector<2x8xf32>
    %90 = vector.multi_reduction <maximumf>, %89, %cst_52 [2] : vector<2x8x8xf32> to vector<2x8xf32>
    %91 = vector.shape_cast %90 : vector<2x8xf32> to vector<2x8x1xf32>
    %92 = vector.broadcast %91 : vector<2x8x1xf32> to vector<2x8x8xf32>
    %93 = arith.subf %89, %92 : vector<2x8x8xf32>
    %94 = math.exp %93 : vector<2x8x8xf32>
    %cst_53 = arith.constant dense<0.000000e+00> : vector<2x8xf32>
    %95 = vector.multi_reduction <add>, %94, %cst_53 [2] : vector<2x8x8xf32> to vector<2x8xf32>
    %96 = vector.shape_cast %95 : vector<2x8xf32> to vector<2x8x1xf32>
    %97 = tpu.reciprocal %96 {approx = true} : vector<2x8x1xf32> -> vector<2x8x1xf32>
    %98 = vector.broadcast %97 : vector<2x8x1xf32> to vector<2x8x8xf32>
    %99 = arith.mulf %94, %98 : vector<2x8x8xf32>
    %100 = vector.broadcast %4 : vector<2x8x1xf32> to vector<2x8x8xf32>
    %101 = arith.mulf %99, %100 : vector<2x8x8xf32>
    %c1_54 = arith.constant 1 : index
    %c0_55 = arith.constant 0 : index
    %c0_56 = arith.constant 0 : index
    %c0_57 = arith.constant 0 : index
    %102 = vector.load %arg14[%c1_54, %c0_55, %c0_56, %c0_57] : memref<2x2x8x8xf32, #tpu.memory_space<vmem>>, vector<1x2x8x8xf32>
    %103 = vector.shape_cast %102 : vector<1x2x8x8xf32> to vector<2x8x8xf32>
    %104 = vector.shape_cast %101 : vector<2x8x8xf32> to vector<1x2x8x8xf32>
    tpu.vector_store %arg14[%c1_54, %c0_55, %c0_56, %c0_57], %104 {strides = array<i32>} : memref<2x2x8x8xf32, #tpu.memory_space<vmem>>, vector<1x2x8x8xf32>,
    %105 = arith.truncf %99 : vector<2x8x8xf32> to vector<2x8x8xbf16>
    "tpu.trace_start"() <{level = 10 : i32, message = "bqk,bkd->bqd"}> : () -> ()
    %cst_58 = arith.constant dense<0.000000e+00> : vector<2x8x16xf32>
    %106 = tpu.matmul %105, %85, %cst_58 {dimension_numbers = #tpu.dot_dimension_numbers<[2], [1], [1], [2], [0, 0, 0, 1, 1, 2], [0], [0]>} : vector<2x8x8xbf16>, vector<2x8x16xbf16>, vector<2x8x16xf32> -> vector<2x8x16xf32>
    "tpu.trace_stop"() : () -> ()
    %107 = vector.shape_cast %106 : vector<2x8x16xf32> to vector<16x16xf32>
    %108 = arith.truncf %107 : vector<16x16xf32> to vector<16x16xbf16>
    %c1_59 = arith.constant 1 : index
    %c0_60 = arith.constant 0 : index
    %c0_61 = arith.constant 0 : index
    %109 = vector.load %arg8[%c1_59, %c0_60, %c0_61] : memref<2x16x32xbf16, #tpu.memory_space<vmem>>, vector<1x16x32xbf16>
    %110 = vector.shape_cast %109 : vector<1x16x32xbf16> to vector<16x32xbf16>
    %cst_62 = arith.constant dense<0.000000e+00> : vector<16x32xf32>
    %111 = tpu.matmul %108, %110, %cst_62 {dimension_numbers = #tpu.dot_dimension_numbers<[1], [0], [0], [1], [0, 0, 1, 1], [], []>} : vector<16x16xbf16>, vector<16x32xbf16>, vector<16x32xf32> -> vector<16x32xf32>
    %112 = arith.addf %59, %111 : vector<16x32xf32>
    %c0_63 = arith.constant 0 : index
    %c0_64 = arith.constant 0 : index
    %113 = vector.load %arg12[%c0_63, %c0_64] : memref<7x64xf32, #tpu.memory_space<vmem>>, vector<7x64xf32>
    %114 = vector.extract_strided_slice %113 {offsets = [0, 0], sizes = [1, 32], strides = [1, 1]} : vector<7x64xf32> to vector<1x32xf32>
    %115 = vector.extract_strided_slice %113 {offsets = [1, 0], sizes = [1, 32], strides = [1, 1]} : vector<7x64xf32> to vector<1x32xf32>
    %116 = vector.extract_strided_slice %113 {offsets = [2, 0], sizes = [1, 32], strides = [1, 1]} : vector<7x64xf32> to vector<1x32xf32>
    %117 = vector.extract_strided_slice %113 {offsets = [3, 0], sizes = [1, 64], strides = [1, 1]} : vector<7x64xf32> to vector<1x64xf32>
    %118 = vector.extract_strided_slice %113 {offsets = [4, 0], sizes = [1, 32], strides = [1, 1]} : vector<7x64xf32> to vector<1x32xf32>
    %119 = vector.extract_strided_slice %113 {offsets = [5, 0], sizes = [1, 32], strides = [1, 1]} : vector<7x64xf32> to vector<1x32xf32>
    %120 = vector.extract_strided_slice %113 {offsets = [6, 0], sizes = [1, 32], strides = [1, 1]} : vector<7x64xf32> to vector<1x32xf32>
    %121 = vector.broadcast %114 : vector<1x32xf32> to vector<16x32xf32>
    %122 = arith.addf %112, %121 : vector<16x32xf32>
    %123 = arith.addf %122, %2 : vector<16x32xf32>
    %cst_65 = arith.constant dense<0.000000e+00> : vector<16xf32>
    %124 = vector.multi_reduction <add>, %123, %cst_65 [1] : vector<16x32xf32> to vector<16xf32>
    %125 = vector.shape_cast %124 : vector<16xf32> to vector<16x1xf32>
    %cst_66 = arith.constant 3.200000e+01 : f32
    %126 = vector.broadcast %cst_66 : f32 to vector<16x1xf32>
    %127 = arith.divf %125, %126 : vector<16x1xf32>
    %128 = vector.broadcast %127 : vector<16x1xf32> to vector<16x32xf32>
    %129 = arith.subf %123, %128 : vector<16x32xf32>
    %130 = arith.mulf %129, %129 : vector<16x32xf32>
    %cst_67 = arith.constant dense<0.000000e+00> : vector<16xf32>
    %131 = vector.multi_reduction <add>, %130, %cst_67 [1] : vector<16x32xf32> to vector<16xf32>
    %132 = vector.shape_cast %131 : vector<16xf32> to vector<16x1xf32>
    %cst_68 = arith.constant 3.200000e+01 : f32
    %133 = vector.broadcast %cst_68 : f32 to vector<16x1xf32>
    %134 = arith.divf %132, %133 : vector<16x1xf32>
    %135 = vector.broadcast %127 : vector<16x1xf32> to vector<16x32xf32>
    %136 = arith.subf %123, %135 : vector<16x32xf32>
    %cst_69 = arith.constant 9.99999974E-6 : f32
    %137 = vector.broadcast %cst_69 : f32 to vector<16x1xf32>
    %138 = arith.addf %134, %137 : vector<16x1xf32>
    %139 = math.rsqrt %138 : vector<16x1xf32>
    %140 = vector.broadcast %139 : vector<16x1xf32> to vector<16x32xf32>
    %141 = arith.mulf %136, %140 : vector<16x32xf32>
    %142 = vector.broadcast %115 : vector<1x32xf32> to vector<16x32xf32>
    %143 = arith.mulf %141, %142 : vector<16x32xf32>
    %144 = vector.broadcast %116 : vector<1x32xf32> to vector<16x32xf32>
    %145 = arith.addf %143, %144 : vector<16x32xf32>
    %146 = vector.broadcast %3 : vector<16x1xf32> to vector<16x32xf32>
    %147 = arith.mulf %145, %146 : vector<16x32xf32>
    %148 = arith.truncf %147 : vector<16x32xf32> to vector<16x32xbf16>
    %c0_70 = arith.constant 0 : index
    %c0_71 = arith.constant 0 : index
    %149 = vector.load %arg10[%c0_70, %c0_71] : memref<32x64xbf16, #tpu.memory_space<vmem>>, vector<32x64xbf16>
    %cst_72 = arith.constant dense<0.000000e+00> : vector<16x64xf32>
    %150 = tpu.matmul %148, %149, %cst_72 {dimension_numbers = #tpu.dot_dimension_numbers<[1], [0], [0], [1], [0, 0, 1, 1], [], []>} : vector<16x32xbf16>, vector<32x64xbf16>, vector<16x64xf32> -> vector<16x64xf32>
    %151 = vector.broadcast %117 : vector<1x64xf32> to vector<16x64xf32>
    %152 = arith.addf %150, %151 : vector<16x64xf32>
    %cst_73 = arith.constant 0.000000e+00 : f32
    %153 = vector.broadcast %cst_73 : f32 to vector<16x64xf32>
    %154 = arith.maximumf %152, %153 : vector<16x64xf32>
    %155 = arith.truncf %154 : vector<16x64xf32> to vector<16x64xbf16>
    %c0_74 = arith.constant 0 : index
    %c0_75 = arith.constant 0 : index
    %156 = vector.load %arg11[%c0_74, %c0_75] : memref<64x32xbf16, #tpu.memory_space<vmem>>, vector<64x32xbf16>
    %cst_76 = arith.constant dense<0.000000e+00> : vector<16x32xf32>
    %157 = tpu.matmul %155, %156, %cst_76 {dimension_numbers = #tpu.dot_dimension_numbers<[1], [0], [0], [1], [0, 0, 1, 1], [], []>} : vector<16x64xbf16>, vector<64x32xbf16>, vector<16x32xf32> -> vector<16x32xf32>
    %158 = vector.broadcast %118 : vector<1x32xf32> to vector<16x32xf32>
    %159 = arith.addf %157, %158 : vector<16x32xf32>
    %160 = arith.addf %159, %147 : vector<16x32xf32>
    %cst_77 = arith.constant dense<0.000000e+00> : vector<16xf32>
    %161 = vector.multi_reduction <add>, %160, %cst_77 [1] : vector<16x32xf32> to vector<16xf32>
    %162 = vector.shape_cast %161 : vector<16xf32> to vector<16x1xf32>
    %cst_78 = arith.constant 3.200000e+01 : f32
    %163 = vector.broadcast %cst_78 : f32 to vector<16x1xf32>
    %164 = arith.divf %162, %163 : vector<16x1xf32>
    %165 = vector.broadcast %164 : vector<16x1xf32> to vector<16x32xf32>
    %166 = arith.subf %160, %165 : vector<16x32xf32>
    %167 = arith.mulf %166, %166 : vector<16x32xf32>
    %cst_79 = arith.constant dense<0.000000e+00> : vector<16xf32>
    %168 = vector.multi_reduction <add>, %167, %cst_79 [1] : vector<16x32xf32> to vector<16xf32>
    %169 = vector.shape_cast %168 : vector<16xf32> to vector<16x1xf32>
    %cst_80 = arith.constant 3.200000e+01 : f32
    %170 = vector.broadcast %cst_80 : f32 to vector<16x1xf32>
    %171 = arith.divf %169, %170 : vector<16x1xf32>
    %172 = vector.broadcast %164 : vector<16x1xf32> to vector<16x32xf32>
    %173 = arith.subf %160, %172 : vector<16x32xf32>
    %cst_81 = arith.constant 9.99999974E-6 : f32
    %174 = vector.broadcast %cst_81 : f32 to vector<16x1xf32>
    %175 = arith.addf %171, %174 : vector<16x1xf32>
    %176 = math.rsqrt %175 : vector<16x1xf32>
    %177 = vector.broadcast %176 : vector<16x1xf32> to vector<16x32xf32>
    %178 = arith.mulf %173, %177 : vector<16x32xf32>
    %179 = vector.broadcast %119 : vector<1x32xf32> to vector<16x32xf32>
    %180 = arith.mulf %178, %179 : vector<16x32xf32>
    %181 = vector.broadcast %120 : vector<1x32xf32> to vector<16x32xf32>
    %182 = arith.addf %180, %181 : vector<16x32xf32>
    %183 = vector.broadcast %3 : vector<16x1xf32> to vector<16x32xf32>
    %184 = arith.mulf %182, %183 : vector<16x32xf32>
    %c0_82 = arith.constant 0 : index
    %c0_83 = arith.constant 0 : index
    %185 = vector.load %arg13[%c0_82, %c0_83] : memref<16x32xf32, #tpu.memory_space<vmem>>, vector<16x32xf32>
    tpu.vector_store %arg13[%c0_82, %c0_83], %184 {strides = array<i32>} : memref<16x32xf32, #tpu.memory_space<vmem>>, vector<16x32xf32>,
    return
  }
  func.func @transform_0(%arg0: i32) -> (i32, i32) {
    %c0_i32 = arith.constant 0 : i32
    %c0_i32_0 = arith.constant 0 : i32
    %c0_i32_1 = arith.constant 0 : i32
    return %c0_i32, %c0_i32_0 : i32, i32
  }
  func.func @transform_1(%arg0: i32) -> (i32, i32) {
    %c0_i32 = arith.constant 0 : i32
    %c0_i32_0 = arith.constant 0 : i32
    %c0_i32_1 = arith.constant 0 : i32
    return %c0_i32, %c0_i32_0 : i32, i32
  }
  func.func @transform_2(%arg0: i32) -> (i32, i32, i32) {
    %c0_i32 = arith.constant 0 : i32
    %c0_i32_0 = arith.constant 0 : i32
    %c0_i32_1 = arith.constant 0 : i32
    %c0_i32_2 = arith.constant 0 : i32
    return %c0_i32, %c0_i32_0, %c0_i32_1 : i32, i32, i32
  }
  func.func @transform_3(%arg0: i32) -> (i32, i32) {
    %c0_i32 = arith.constant 0 : i32
    %c0_i32_0 = arith.constant 0 : i32
    %c0_i32_1 = arith.constant 0 : i32
    return %c0_i32, %c0_i32_0 : i32, i32
  }
  func.func @transform_4(%arg0: i32) -> (i32, i32, i32) {
    %c0_i32 = arith.constant 0 : i32
    %c0_i32_0 = arith.constant 0 : i32
    %c0_i32_1 = arith.constant 0 : i32
    %c0_i32_2 = arith.constant 0 : i32
    return %c0_i32, %c0_i32_0, %c0_i32_1 : i32, i32, i32
  }
  func.func @transform_5(%arg0: i32) -> (i32, i32, i32) {
    %c0_i32 = arith.constant 0 : i32
    %c0_i32_0 = arith.constant 0 : i32
    %c0_i32_1 = arith.constant 0 : i32
    %c0_i32_2 = arith.constant 0 : i32
    return %c0_i32, %c0_i32_0, %c0_i32_1 : i32, i32, i32
  }
  func.func @transform_6(%arg0: i32) -> (i32, i32, i32) {
    %c0_i32 = arith.constant 0 : i32
    %c0_i32_0 = arith.constant 0 : i32
    %c0_i32_1 = arith.constant 0 : i32
    %c0_i32_2 = arith.constant 0 : i32
    return %c0_i32, %c0_i32_0, %c0_i32_1 : i32, i32, i32
  }
  func.func @transform_7(%arg0: i32) -> (i32, i32, i32) {
    %c0_i32 = arith.constant 0 : i32
    %c0_i32_0 = arith.constant 0 : i32
    %c0_i32_1 = arith.constant 0 : i32
    %c0_i32_2 = arith.constant 0 : i32
    return %c0_i32, %c0_i32_0, %c0_i32_1 : i32, i32, i32
  }
  func.func @transform_8(%arg0: i32) -> (i32, i32, i32) {
    %c0_i32 = arith.constant 0 : i32
    %c0_i32_0 = arith.constant 0 : i32
    %c0_i32_1 = arith.constant 0 : i32
    %c0_i32_2 = arith.constant 0 : i32
    return %c0_i32, %c0_i32_0, %c0_i32_1 : i32, i32, i32
  }
  func.func @transform_9(%arg0: i32) -> (i32, i32) {
    %c0_i32 = arith.constant 0 : i32
    %c0_i32_0 = arith.constant 0 : i32
    %c0_i32_1 = arith.constant 0 : i32
    return %c0_i32, %c0_i32_0 : i32, i32
  }
  func.func @transform_10(%arg0: i32) -> (i32, i32) {
    %c0_i32 = arith.constant 0 : i32
    %c0_i32_0 = arith.constant 0 : i32
    %c0_i32_1 = arith.constant 0 : i32
    return %c0_i32, %c0_i32_0 : i32, i32
  }
  func.func @transform_11(%arg0: i32) -> (i32, i32) {
    %c0_i32 = arith.constant 0 : i32
    %c0_i32_0 = arith.constant 0 : i32
    %c0_i32_1 = arith.constant 0 : i32
    return %c0_i32, %c0_i32_0 : i32, i32
  }
  func.func @transform_12(%arg0: i32) -> (i32, i32) {
    %c0_i32 = arith.constant 0 : i32
    %c0_i32_0 = arith.constant 0 : i32
    %c0_i32_1 = arith.constant 0 : i32
    return %c0_i32, %c0_i32_0 : i32, i32
  }
  func.func @transform_13(%arg0: i32) -> (i32, i32, i32, i32) {
    %c0_i32 = arith.constant 0 : i32
    %c0_i32_0 = arith.constant 0 : i32
    %c0_i32_1 = arith.constant 0 : i32
    %c0_i32_2 = arith.constant 0 : i32
    %c0_i32_3 = arith.constant 0 : i32
    return %c0_i32, %c0_i32_0, %c0_i32_1, %c0_i32_2 : i32, i32, i32, i32
  }
}

</mosaic_0001>

<bundles_post_ra>
// kernel: tpu_custom_call.1
= control target key start
LH: loop header
LB: loop body
LE: loop exit
PB: predicated region body
PF: predicated region fallthrough
CT: control target
= control target key end

     0   :  { %19 = vsyncpa [#allocation3], 0  ;;  %v1618_v1 = vmov 0.0   ;;  %vm1619_vm0 = vmmov 0   ;;  %vm82_vm1 = vcmask 261120   ;;  %s2017_s0 = inlined_call_operand.vmem [shape: bf16[16,32], index: 0, kind: input, shape index: {}]   ;;  %s2018_s1 = inlined_call_operand.vmem [shape: bf16[16,32], index: 1, kind: input, shape index: {}]   ;;  %s2019_s2 = inlined_call_operand.vmem [shape: f32[2,8,8], index: 2, kind: input, shape index: {}]   ;;  %s2020_s3 = inlined_call_operand.vmem [shape: f32[16,1], index: 3, kind: input, shape index: {}]   ;;  %s2021_s4 = inlined_call_operand.vmem [shape: bf16[2,32,16], index: 4, kind: input, shape index: {}]   ;;  %s2022_s5 = inlined_call_operand.vmem [shape: bf16[2,32,16], index: 5, kind: input, shape index: {}]   ;;  %s2023_s6 = inlined_call_operand.vmem [shape: bf16[2,32,16], index: 6, kind: input, shape index: {}]   ;;  %s2024_s7 = inlined_call_operand.vmem [shape: bf16[2,16,32], index: 7, kind: input, shape index: {}]   ;;  %s2025_s8 = inlined_call_operand.vmem [shape: f32[2,3,16], index: 8, kind: input, shape index: {}]   ;;  %s2026_s9 = inlined_call_operand.vmem [shape: bf16[32,64], index: 9, kind: input, shape index: {}]   ;;  %s2027_s10 = inlined_call_operand.vmem [shape: bf16[64,32], index: 10, kind: input, shape index: {}]   ;;  %s2028_s11 = inlined_call_operand.vmem [shape: f32[7,64], index: 11, kind: input, shape index: {}]   ;;  %s2029_s12 = inlined_call_operand.hbm [shape: f32[16,32], index: 12, kind: output, shape index: {0}]   ;;  %s2030_s13 = inlined_call_operand.hbm [shape: f32[2,2,8,8], index: 13, kind: output, shape index: {1}]  }
   0x1   :  { %v1523_v0 = vld [vmem:[%s2022_s5] sm:$0xff]   ;;  %1394 = vmatprep.subr.bf16.mxu1 %v1618_v1  ;;  %1386 = vmatprep.subr.bf16.mxu0 %v1618_v1  ;;  %v1524_v2 = vld [vmem:[%s2022_s5 + $0x8] sm:$0xff]  }
   0x2   :  { %1395 = vmatpush3.bf16.msra.mxu1 %v1523_v0  ;;  %v1525_v3 = vld [vmem:[%s2021_s4] sm:$0xff]   ;;  %1398 = vmatprep.mubr.msk.bf16.mxu1 %vm1619_vm0, %v1618_v1  ;;  %v1527_v5 = vld [vmem:[%s2021_s4 + $0x8] sm:$0xff]  }
   0x3   :  { %1396 = vmatprep.subr.bf16.mxu1 %v1618_v1  ;;  %v1712_v4 = vld [vmem:[%s2018_s1] sm:$0xff]   ;;  %1390 = vmatprep.mubr.msk.bf16.mxu0 %vm1619_vm0, %v1618_v1  ;;  %v1530_v8 = vld [vmem:[%s2023_s6 + $0x8] sm:$0xff]  }
   0x4   :  { %1387 = vmatpush3.bf16.msra.mxu0 %v1525_v3  ;;  %v1723_v6 = vld [vmem:[%s2017_s0] sm:$0xff]  }
   0x5   :  { %1388 = vmatprep.subr.bf16.mxu0 %v1618_v1  ;;  %v1529_v7 = vld [vmem:[%s2023_s6] sm:$0xff]  }
   0x6   :  { %1397 = vmatpush3.bf16.msra.mxu1 %v1524_v2 }
   0x7   :  { %1410 = vmatprep.subr.bf16.mxu1 %v1618_v1 }
   0x8   :  { %1389 = vmatpush3.bf16.msra.mxu0 %v1527_v5 }
   0x9   :  { %1399 = vmatmul.mubr.msk.bf16.vlgmr.msra.gmra.mrb[0].mxu1 %vm82_vm1, %v1712_v4  ;;  %1402 = vmatprep.subr.bf16.mxu0 %v1618_v1 }
   0xa   :  { %1412 = vmatprep.mubr.msk.bf16.mxu1 %vm1619_vm0, %v1618_v1 }
   0xb   :  { %1391 = vmatmul.mubr.msk.bf16.vlgmr.msra.gmra.mrb[0].mxu0 %vm82_vm1, %v1723_v6 }
   0xc   :  { %1403 = vmatpush3.bf16.msra.mxu0 %v1529_v7  ;;  %1406 = vmatprep.mubr.msk.bf16.mxu0 %vm1619_vm0, %v1618_v1 }
   0xd   :  { %1404 = vmatprep.subr.bf16.mxu0 %v1618_v1 }
  0x10   :  { %1405 = vmatpush3.bf16.msra.mxu0 %v1530_v8 }
  0x11   :  { %1416 = vmatprep.subr.bf16.mxu0 %v1618_v1 }
  0x12   :  { %20 = vsyncpa [#allocation5], 0  ;;  %v61_v9 = vlaneseq  ;;  %v56_v12 = vld [vmem:[%s2025_s8] sm:$0x7]  ;;  %vm263_vm2 = vcmask 130048   ;;  %vm402_vm3 = vcmask 1043456  }
  0x13   :  { %1407 = vmatmul.mubr.msk.bf16.vlgmr.msra.gmra.mrb[4].mxu0 %vm82_vm1, %v1712_v4  ;;  %v1781_v50 = vld [vmem:[%s2019_s2 + $0x8] sm:$0xff]  ;;  %v1786_v56 = vld [vmem:[%s2019_s2] sm:$0xff]  ;;  %vm360_vm4 = vcmask 64512   ;;  %vm1164_vm5 = vcmask 523264  }
  0x14   :  { %1418 = vmatprep.mubr.msk.bf16.mxu0 %vm1619_vm0, %v1618_v1  ;;  %v1747_v10 = vshrl.u32 %v61_v9, 7 }
  0x16   :  { %v1750_v11 = vsub.s32 1, %v1747_v10  ;;  %v1757_v14 = vsub.s32 0, %v1747_v10  ;;  %v1761_v25 = vsub.s32 2, %v1747_v10 }
  0x18   :  { %v134_v13 = vrot.slane %v56_v12, %v1750_v11  ;;  %v64_v18 = vrot.slane %v56_v12, %v1757_v14  ;;  %v203_v32 = vrot.slane %v56_v12, %v1761_v25 }
  0xdc   :  { %v189_v15 = vpop.f32.mrb[0].mxu1 }
  0xdd   :  { %v190_v16 = vadd.f32 %v189_v15, %v134_v13  ;;  %v1400_v17 = vpop.f32.mrb[1].mxu1 }
  0xde   :  { %v192_v19 = vpop.f32.mrb[2].mxu1  ;;  %v120_v20 = vpop.f32.mrb[0].mxu0 }
  0xdf   :  { %v259_v21 = vpack.c.bf16 %v190_v16, %v190_v16  ;;  %v193_v22 = vadd.f32 %v192_v19, %v134_v13  ;;  %v1401_v23 = vpop.f32.mrb[3].mxu1  ;;  %v1392_v24 = vpop.f32.mrb[1].mxu0  ;;  %v121_v29 = vadd.f32 %v120_v20, %v64_v18 }
  0xe0   :  { %v123_v26 = vpop.f32.mrb[2].mxu0  ;;  %v1533_v23 = vld [vmem:[%s2021_s4 + $0x10] sm:$0xff]  }
  0xe1   :  { %v268_v27 = vsel %vm263_vm2, %v259_v21, 0  ;;  %v260_v28 = vpack.c.bf16 %v193_v22, %v193_v22  ;;  %v1393_v30 = vpop.f32.mrb[3].mxu0  ;;  %v257_v33 = vpack.c.bf16 %v121_v29, %v121_v29  ;;  %v124_v34 = vadd.f32 %v123_v26, %v64_v18  ;;  %v1531_v18 = vld [vmem:[%s2022_s5 + $0x10] sm:$0xff]   ;;  %v1532_v22 = vld [vmem:[%s2022_s5 + $0x18] sm:$0xff]  }
  0xe2   :  { %1411 = vmatpush3.bf16.xpose.msra.mxu1 %v268_v27  ;;  %v1534_v26 = vld [vmem:[%s2021_s4 + $0x18] sm:$0xff]   ;;  %v1535_v27 = vld [vmem:[%s2023_s6 + $0x10] sm:$0xff]  }
  0xe3   :  { %v314_v31 = vsel %vm263_vm2, %v260_v28, 0  ;;  %1422 = vmatprep.subr.bf16.mxu1 %v1618_v1  ;;  %v258_v39 = vpack.c.bf16 %v124_v34, %v124_v34  ;;  %v1536_v28 = vld [vmem:[%s2023_s6 + $0x18] sm:$0xff]  }
  0xe4   :  { %1417 = vmatpush3.bf16.xpose.msra.mxu0 %v314_v31 }
  0xe5   :  { %1428 = vmatprep.subr.bf16.mxu0 %v1618_v1 }
  0xe6   :  { %v250_v35 = vpop.f32.mrb[4].mxu0 }
  0xe7   :  { %v251_v36 = vadd.f32 %v250_v35, %v203_v32  ;;  %v1408_v37 = vpop.f32.mrb[5].mxu0 }
  0xe8   :  { %v253_v38 = vpop.f32.mrb[6].mxu0 }
  0xe9   :  { %1413 = vmatmul.mubr.msk.bf16.vlgmr.msra.gmra.mrb[4].mxu1 %vm263_vm2, %v257_v33  ;;  %v261_v40 = vpack.c.bf16 %v251_v36, %v251_v36  ;;  %v254_v41 = vadd.f32 %v253_v38, %v203_v32  ;;  %v1409_v42 = vpop.f32.mrb[7].mxu0  ;;  %v1300_v32 = vld [vmem:[%s2025_s8 + $0x4] sm:$0x7] }
  0xea   :  { %1424 = vmatprep.mubr.msk.bf16.mxu1 %vm1619_vm0, %v1618_v1  ;;  %v505_v42 = vrot.slane %v1300_v32, %v1757_v14 }
  0xeb   :  { %1419 = vmatmul.mubr.msk.bf16.vlgmr.msra.gmra.mrb[8].mxu0 %vm263_vm2, %v258_v39  ;;  %v404_v43 = vsel %vm402_vm3, %v261_v40, 0  ;;  %v262_v44 = vpack.c.bf16 %v254_v41, %v254_v41 }
  0xec   :  { %1423 = vmatpush3.bf16.msra.mxu1 %v404_v43  ;;  %1430 = vmatprep.mubr.msk.bf16.mxu0 %vm1619_vm0, %v1618_v1 }
  0xed   :  { %v450_v45 = vsel %vm402_vm3, %v262_v44, 0  ;;  %1434 = vmatprep.subr.bf16.mxu1 %v1618_v1 }
  0xee   :  { %1429 = vmatpush3.bf16.msra.mxu0 %v450_v45 }
  0xef   :  { %1442 = vmatprep.subr.bf16.mxu0 %v1618_v1 }
 0x1bc   :  { %v304_v46 = vpop.f32.mrb[4].mxu1 }
 0x1bd   :  { %v1414_v47 = vpop.f32.mrb[5].mxu1  ;;  %v356_v51 = vmul.f32 0.25, %v304_v46 }
 0x1be   :  { %v307_v48 = vpop.f32.mrb[6].mxu1  ;;  %v350_v49 = vpop.f32.mrb[8].mxu0 }
 0x1bf   :  { %v357_v52 = vmul.f32 0.25, %v350_v49  ;;  %v1415_v53 = vpop.f32.mrb[7].mxu1  ;;  %v1420_v54 = vpop.f32.mrb[9].mxu0  ;;  %v358_v60 = vadd.f32 %v356_v51, %v1786_v56 }
 0x1c0   :  { %v353_v55 = vpop.f32.mrb[10].mxu0 }
 0x1c1   :  { %v1421_v57 = vpop.f32.mrb[11].mxu0  ;;  %v359_v58 = vadd.f32 %v357_v52, %v1781_v50  ;;  %v361_v61 = vsel %vm360_vm4, %v358_v60, -inf }
 0x1c3   :  { %v364_v59 = vsel %vm360_vm4, %v359_v58, -inf }
 0x1c4   :  { %365 = vmax.xlane.f32.xlu0 %v364_v59 }
 0x1c8   :  { %362 = vmax.xlane.f32.xlu0 %v361_v61 }
 0x251   :  { %v366_v62 = vpop.xlane.xlu0 %365 }
 0x252   :  { %v368_v63 = vsub.f32 %v359_v58, %v366_v62 }
 0x254   :  { %v371_v0 = vmul.f32 1.442695, %v368_v63 }
 0x255   :  { %v363_v2 = vpop.xlane.xlu0 %362 }
 0x256   :  { %1546 = vpow2.f32 %v371_v0  ;;  %v367_v3 = vsub.f32 %v358_v60, %v363_v2  ;;  %v629_v60 = vrot.slane %v1300_v32, %v1761_v25 }
 0x258   :  { %v369_v5 = vmul.f32 1.442695, %v367_v3 }
 0x25a   :  { %1548 = vpow2.f32 %v369_v5 }
 0x260   :  { %v1547_v7 = vpop.eup %1546 }
 0x261   :  { %v376_v8 = vsel %vm360_vm4, %v1547_v7, 0.0 }
 0x262   :  { %377 = vadd.xlane.f32.xlu1 %v376_v8 }
 0x264   :  { %v1549_v9 = vpop.eup %1548 }
 0x265   :  { %v373_v12 = vsel %vm360_vm4, %v1549_v9, 0.0 }
 0x266   :  { %374 = vadd.xlane.f32.xlu1 %v373_v12 }
 0x2ef   :  { %v378_v13 = vpop.xlane.xlu1 %377 }
 0x2f0   :  { %1550 = vrcp.f32 %v378_v13 }
 0x2f3   :  { %v375_v15 = vpop.xlane.xlu1 %374 }
 0x2f4   :  { %1552 = vrcp.f32 %v375_v15 }
 0x2fa   :  { %v1551_v16 = vpop.eup %1550 }
 0x2fb   :  { %v1794_v17 = vmul.f32 %v1551_v16, %v1547_v7 }
 0x2fd   :  { %v398_v19 = vpack.c.bf16 %v1794_v17, %v1794_v17 }
 0x2fe   :  { %v1553_v20 = vpop.eup %1552 }
 0x2ff   :  { %v1801_v21 = vmul.f32 %v1553_v20, %v1549_v9  ;;  %1431 = vmatmul.mubr.msk.bf16.vlgmr.msra.gmra.mrb[12].mxu0 %vm360_vm4, %v398_v19 }
 0x300   :  { %1443 = vmatpush3.bf16.msra.mxu0 %v1531_v18  ;;  %1446 = vmatprep.mubr.msk.bf16.mxu0 %vm1619_vm0, %v1618_v1 }
 0x301   :  { %v397_v24 = vpack.c.bf16 %v1801_v21, %v1801_v21  ;;  %1444 = vmatprep.subr.bf16.mxu0 %v1618_v1 }
 0x303   :  { %1425 = vmatmul.mubr.msk.bf16.vlgmr.msra.gmra.mrb[8].mxu1 %vm360_vm4, %v397_v24 }
 0x304   :  { %1445 = vmatpush3.bf16.msra.mxu0 %v1532_v22  ;;  %1435 = vmatpush3.bf16.msra.mxu1 %v1533_v23 }
 0x305   :  { %1436 = vmatprep.subr.bf16.mxu1 %v1618_v1  ;;  %1438 = vmatprep.mubr.msk.bf16.mxu1 %vm1619_vm0, %v1618_v1 }
 0x306   :  { %1458 = vmatprep.subr.bf16.mxu0 %v1618_v1 }
 0x307   :  { %1447 = vmatmul.mubr.msk.bf16.vlgmr.msra.gmra.mrb[16].mxu0 %vm82_vm1, %v1712_v4 }
 0x308   :  { %1437 = vmatpush3.bf16.msra.mxu1 %v1534_v26  ;;  %1460 = vmatprep.mubr.msk.bf16.mxu0 %vm1619_vm0, %v1618_v1 }
 0x309   :  { %1450 = vmatprep.subr.bf16.mxu1 %v1618_v1 }
 0x30b   :  { %1439 = vmatmul.mubr.msk.bf16.vlgmr.msra.gmra.mrb[12].mxu1 %vm82_vm1, %v1723_v6 }
 0x30c   :  { %1454 = vmatprep.mubr.msk.bf16.mxu1 %vm1619_vm0, %v1618_v1  ;;  %1451 = vmatpush3.bf16.msra.mxu1 %v1535_v27 }
 0x30d   :  { %1452 = vmatprep.subr.bf16.mxu1 %v1618_v1 }
 0x310   :  { %1453 = vmatpush3.bf16.msra.mxu1 %v1536_v28 }
 0x311   :  { %1464 = vmatprep.subr.bf16.mxu1 %v1618_v1 }
 0x313   :  { %1455 = vmatmul.mubr.msk.bf16.vlgmr.msra.gmra.mrb[16].mxu1 %vm82_vm1, %v1712_v4  ;;  %v567_v4 = vrot.slane %v1300_v32, %v1750_v11 }
 0x314   :  { %1466 = vmatprep.mubr.msk.bf16.mxu1 %vm1619_vm0, %v1618_v1 }
 0x3d2   :  { %v1844_v29 = vpop.f32.mrb[12].mxu0 }
 0x3d3   :  { %v1432_v30 = vpop.f32.mrb[13].mxu0 }
 0x3d4   :  { %v489_v31 = vpop.f32.mrb[14].mxu0 }
 0x3d5   :  { %v1433_v33 = vpop.f32.mrb[15].mxu0 }
 0x3d6   :  { %v1849_v34 = vpop.f32.mrb[8].mxu1 }
 0x3d7   :  { %v492_v35 = vpack.c.bf16 %v1844_v29, %v1849_v34  ;;  %v1426_v36 = vpop.f32.mrb[9].mxu1 }
 0x3d8   :  { %v443_v37 = vpop.f32.mrb[10].mxu1 }
 0x3d9   :  { %v1427_v38 = vpop.f32.mrb[11].mxu1 }
 0x3da   :  { %v614_v39 = vpop.f32.mrb[16].mxu0 }
 0x3db   :  { %v615_v40 = vadd.f32 %v614_v39, %v567_v4  ;;  %v1448_v41 = vpop.f32.mrb[17].mxu0 }
 0x3dc   :  { %v617_v43 = vpop.f32.mrb[18].mxu0 }
 0x3dd   :  { %v685_v44 = vpack.c.bf16 %v615_v40, %v615_v40  ;;  %v618_v45 = vadd.f32 %v617_v43, %v567_v4  ;;  %v1449_v46 = vpop.f32.mrb[19].mxu0 }
 0x3de   :  { %v552_v47 = vpop.f32.mrb[12].mxu1 }
 0x3df   :  { %v693_v48 = vsel %vm263_vm2, %v685_v44, 0  ;;  %v686_v49 = vpack.c.bf16 %v618_v45, %v618_v45  ;;  %v553_v51 = vadd.f32 %v552_v47, %v505_v42  ;;  %v1440_v52 = vpop.f32.mrb[13].mxu1  ;;  %v1538_v45 = vld [vmem:[%s2024_s7 + $0x8] sm:$0xff]  }
 0x3e0   :  { %1459 = vmatpush3.bf16.xpose.msra.mxu0 %v693_v48  ;;  %v555_v53 = vpop.f32.mrb[14].mxu1  ;;  %v1537_v48 = vld [vmem:[%s2024_s7] sm:$0xff]  }
 0x3e1   :  { %v739_v54 = vsel %vm263_vm2, %v686_v49, 0  ;;  %v1441_v55 = vpop.f32.mrb[15].mxu1  ;;  %1470 = vmatprep.subr.bf16.mxu0 %v1618_v1  ;;  %v683_v57 = vpack.c.bf16 %v553_v51, %v553_v51  ;;  %v556_v58 = vadd.f32 %v555_v53, %v505_v42 }
 0x3e2   :  { %1465 = vmatpush3.bf16.xpose.msra.mxu1 %v739_v54 }
 0x3e3   :  { %1476 = vmatprep.subr.bf16.mxu1 %v1618_v1  ;;  %v684_v59 = vpack.c.bf16 %v556_v58, %v556_v58 }
 0x3e6   :  { %v676_v61 = vpop.f32.mrb[16].mxu1 }
 0x3e7   :  { %1461 = vmatmul.mubr.msk.bf16.vlgmr.msra.gmra.mrb[20].mxu0 %vm263_vm2, %v683_v57  ;;  %v677_v62 = vadd.f32 %v676_v61, %v629_v60  ;;  %v1456_v63 = vpop.f32.mrb[17].mxu1 }
 0x3e8   :  { %1472 = vmatprep.mubr.msk.bf16.mxu0 %vm1619_vm0, %v1618_v1  ;;  %v679_v0 = vpop.f32.mrb[18].mxu1 }
 0x3e9   :  { %1467 = vmatmul.mubr.msk.bf16.vlgmr.msra.gmra.mrb[20].mxu1 %vm263_vm2, %v684_v59  ;;  %v687_v2 = vpack.c.bf16 %v677_v62, %v677_v62  ;;  %v680_v3 = vadd.f32 %v679_v0, %v629_v60  ;;  %v1457_v5 = vpop.f32.mrb[19].mxu1  ;;  %v1910_v62 = vld [vmem:[%s2028_s11] sm:$0x7f] }
 0x3ea   :  { %1478 = vmatprep.mubr.msk.bf16.mxu1 %vm1619_vm0, %v1618_v1  ;;  %v1014_v63 = vrot.slane %v1910_v62, %v1757_v14  ;;  %v50_v5 = vunpack.c.l.bf16 %v1723_v6  ;;  %v1620_v14 = vmov 0  }
 0x3eb   :  { %v818_v7 = vsel %vm402_vm3, %v687_v2, 0  ;;  %v688_v8 = vpack.c.bf16 %v680_v3, %v680_v3  ;;  %1522 = vset.pattern.permute.xlu1 %v1620_v14  ;;  %1521 = vset.pattern.permute.xlu0 %v1620_v14 }
 0x3ec   :  { %1471 = vmatpush3.bf16.msra.mxu0 %v818_v7 }
 0x3ed   :  { %v864_v9 = vsel %vm402_vm3, %v688_v8, 0  ;;  %1482 = vmatprep.subr.bf16.mxu0 %v1618_v1 }
 0x3ee   :  { %1477 = vmatpush3.bf16.msra.mxu1 %v864_v9 }
 0x3ef   :  { %1488 = vmatprep.subr.bf16.mxu1 %v1618_v1 }
 0x4ba   :  { %v729_v12 = vpop.f32.mrb[20].mxu0 }
 0x4bb   :  { %v781_v13 = vmul.f32 0.25, %v729_v12  ;;  %v1462_v15 = vpop.f32.mrb[21].mxu0 }
 0x4bc   :  { %v732_v16 = vpop.f32.mrb[22].mxu0  ;;  %v775_v18 = vpop.f32.mrb[20].mxu1 }
 0x4bd   :  { %v782_v19 = vmul.f32 0.25, %v775_v18  ;;  %v1463_v20 = vpop.f32.mrb[23].mxu0  ;;  %v1468_v22 = vpop.f32.mrb[21].mxu1  ;;  %v783_v23 = vadd.f32 %v781_v13, %v1786_v56  ;;  %v51_v13 = vunpack.c.h.bf16 %v1723_v6 }
 0x4be   :  { %v778_v24 = vpop.f32.mrb[22].mxu1 }
 0x4bf   :  { %v1469_v26 = vpop.f32.mrb[23].mxu1  ;;  %v785_v27 = vsel %vm360_vm4, %v783_v23, -inf  ;;  %v784_v28 = vadd.f32 %v782_v19, %v1781_v50 }
 0x4c0   :  { %786 = vmax.xlane.f32.xlu0 %v785_v27 }
 0x4c1   :  { %v788_v30 = vsel %vm360_vm4, %v784_v28, -inf }
 0x4c2   :  { %789 = vmax.xlane.f32.xlu1 %v788_v30 }
 0x54d   :  { %v787_v31 = vpop.xlane.xlu0 %786 }
 0x54e   :  { %v791_v32 = vsub.f32 %v783_v23, %v787_v31 }
 0x54f   :  { %v790_v33 = vpop.xlane.xlu1 %789 }
 0x550   :  { %v793_v36 = vmul.f32 1.442695, %v791_v32  ;;  %v792_v4 = vsub.f32 %v784_v28, %v790_v33  ;;  %v53_v33 = vld [vmem:[%s2020_s3 + $0x8] sm:$0xff] }
 0x552   :  { %1554 = vpow2.f32 %v793_v36  ;;  %v795_v37 = vmul.f32 1.442695, %v792_v4  ;;  %v52_v36 = vld [vmem:[%s2020_s3] sm:$0xff] }
 0x553   :  { %v1539_v4 = vld [vmem:[%s2026_s9] sm:$0xff]  }
 0x554   :  { %1556 = vpow2.f32 %v795_v37  ;;  %v1540_v37 = vld [vmem:[%s2026_s9 + $0x8] sm:$0xff]  }
 0x55c   :  { %v1555_v38 = vpop.eup %1554 }
 0x55d   :  { %v797_v56 = vsel %vm360_vm4, %v1555_v38, 0.0 }
 0x55e   :  { %v1557_v39 = vpop.eup %1556  ;;  %798 = vadd.xlane.f32.xlu0 %v797_v56  ;;  %v1542_v56 = vld [vmem:[%s2027_s10 + $0x8] sm:$0xff]  }
 0x55f   :  { %v800_v40 = vsel %vm360_vm4, %v1557_v39, 0.0 }
 0x560   :  { %801 = vadd.xlane.f32.xlu1 %v800_v40 }
 0x5eb   :  { %v799_v50 = vpop.xlane.xlu0 %798 }
 0x5ec   :  { %1558 = vrcp.f32 %v799_v50 }
 0x5ed   :  { %v802_v41 = vpop.xlane.xlu1 %801 }
 0x5ee   :  { %1560 = vrcp.f32 %v802_v41 }
 0x5f6   :  { %v1559_v42 = vpop.eup %1558 }
 0x5f7   :  { %v1876_v43 = vmul.f32 %v1559_v42, %v1555_v38  ;;  %v1541_v38 = vld [vmem:[%s2027_s10] sm:$0xff]  }
 0x5f8   :  { %v1561_v44 = vpop.eup %1560 }
 0x5f9   :  { %v1881_v46 = vmul.f32 %v1561_v44, %v1557_v39  ;;  %v812_v47 = vpack.c.bf16 %v1876_v43, %v1876_v43 }
 0x5fb   :  { %1473 = vmatmul.mubr.msk.bf16.vlgmr.msra.gmra.mrb[24].mxu0 %vm360_vm4, %v812_v47  ;;  %v813_v49 = vpack.c.bf16 %v1881_v46, %v1881_v46 }
 0x5fc   :  { %1483 = vmatpush3.bf16.msra.mxu0 %v1538_v45  ;;  %1484 = vmatprep.mubr.msk.bf16.mxu0 %vm1619_vm0, %v1618_v1 }
 0x5fd   :  { %1479 = vmatmul.mubr.msk.bf16.vlgmr.msra.gmra.mrb[24].mxu1 %vm360_vm4, %v813_v49  ;;  %1494 = vmatprep.subr.bf16.mxu0 %v1618_v1 }
 0x5fe   :  { %1489 = vmatpush3.bf16.msra.mxu1 %v1537_v48  ;;  %1490 = vmatprep.mubr.msk.bf16.mxu1 %vm1619_vm0, %v1618_v1 }
 0x5ff   :  { %1502 = vmatprep.subr.bf16.mxu1 %v1618_v1 }
 0x605   :  { %1491 = vmatmul.mubr.msk.bf16.vlgmr.msra.gmra.mrb[28].mxu1 %vm263_vm2, %v492_v35 }
 0x606   :  { %1510 = vmatprep.mubr.msk.bf16.mxu1 %vm1619_vm0, %v1618_v1  ;;  %1503 = vmatpush3.bf16.msra.mxu1 %v1541_v38 }
 0x607   :  { %1504 = vmatprep.subr.bf16.mxu1 %v1618_v1 }
 0x60a   :  { %1505 = vmatpush3.bf16.msra.mxu1 %v1542_v56 }
 0x60b   :  { %1506 = vmatprep.subr.bf16.mxu1 %v1618_v1 }
 0x6ce   :  { %v854_v51 = vpop.f32.mrb[24].mxu0 }
 0x6cf   :  { %v1474_v52 = vpop.f32.mrb[25].mxu0 }
 0x6d0   :  { %v857_v53 = vpop.f32.mrb[26].mxu0  ;;  %v900_v54 = vpop.f32.mrb[24].mxu1 }
 0x6d1   :  { %v906_v55 = vpack.c.bf16 %v900_v54, %v854_v51  ;;  %v1475_v57 = vpop.f32.mrb[27].mxu0  ;;  %v1480_v58 = vpop.f32.mrb[25].mxu1  ;;  %v1055_v53 = vrot.slane %v1910_v62, %v1761_v25  ;;  %v1544_v25 = vld [vmem:[%s2027_s10 + $0x18] sm:$0xff]  }
 0x6d2   :  { %v903_v59 = vpop.f32.mrb[26].mxu1 }
 0x6d3   :  { %v1481_v60 = vpop.f32.mrb[27].mxu1  ;;  %1485 = vmatmul.mubr.msk.bf16.vlgmr.msra.gmra.mrb[28].mxu0 %vm263_vm2, %v906_v55 }
 0x6d4   :  { %1498 = vmatprep.mubr.msk.bf16.mxu0 %vm1619_vm0, %v1618_v1  ;;  %1495 = vmatpush3.bf16.msra.mxu0 %v1539_v4 }
 0x6d5   :  { %1496 = vmatprep.subr.bf16.mxu0 %v1618_v1 }
 0x6d8   :  { %v1003_v29 = vpop.f32.mrb[28].mxu1  ;;  %1497 = vmatpush3.bf16.msra.mxu0 %v1540_v37 }
 0x6d9   :  { %v1492_v34 = vpop.f32.mrb[29].mxu1 }
 0x6da   :  { %v1006_v35 = vpop.f32.mrb[30].mxu1 }
 0x6db   :  { %v1493_v61 = vpop.f32.mrb[31].mxu1 }
 0x7a6   :  { %v953_v0 = vpop.f32.mrb[28].mxu0 }
 0x7a7   :  { %v1004_v2 = vadd.f32 %v1003_v29, %v953_v0  ;;  %v1486_v3 = vpop.f32.mrb[29].mxu0 }
 0x7a8   :  { %v956_v7 = vpop.f32.mrb[30].mxu0 }
 0x7a9   :  { %v1015_v8 = vadd.f32 %v1014_v63, %v1004_v2  ;;  %v1007_v9 = vadd.f32 %v1006_v35, %v956_v7  ;;  %v1487_v12 = vpop.f32.mrb[31].mxu0  ;;  %v1067_v35 = vsub.s32 3, %v1747_v10 }
 0x7ab   :  { %v1016_v15 = vadd.f32 %v1014_v63, %v1007_v9  ;;  %v1017_v16 = vadd.f32 %v1015_v8, %v50_v5  ;;  %v1068_v61 = vrot.slane %v1910_v62, %v1067_v35 }
 0x7ad   :  { %v1019_v18 = vsel %vm82_vm1, %v1017_v16, 0.0  ;;  %v1018_v19 = vadd.f32 %v1016_v15, %v51_v13 }
 0x7ae   :  { %1020 = vadd.xlane.f32.xlu0 %v1019_v18 }
 0x7af   :  { %v1022_v20 = vsel %vm82_vm1, %v1018_v19, 0.0 }
 0x7b0   :  { %1023 = vadd.xlane.f32.xlu1 %v1022_v20 }
 0x83b   :  { %v1021_v22 = vpop.xlane.xlu0 %1020 }
 0x83c   :  { %v1026_v23 = vmul.f32 0.03125, %v1021_v22 }
 0x83d   :  { %v1024_v24 = vpop.xlane.xlu1 %1023 }
 0x83e   :  { %v1028_v26 = vsub.f32 %v1017_v16, %v1026_v23  ;;  %v1027_v27 = vmul.f32 0.03125, %v1024_v24 }
 0x840   :  { %v1029_v28 = vsub.f32 %v1018_v19, %v1027_v27  ;;  %v1030_v30 = vmul.f32 %v1028_v26, %v1028_v26 }
 0x842   :  { %v1032_v6 = vsel %vm82_vm1, %v1030_v30, 0.0  ;;  %v1031_v31 = vmul.f32 %v1029_v28, %v1029_v28 }
 0x843   :  { %1033 = vadd.xlane.f32.xlu0 %v1032_v6 }
 0x844   :  { %v1035_v32 = vsel %vm82_vm1, %v1031_v31, 0.0 }
 0x845   :  { %1036 = vadd.xlane.f32.xlu1 %v1035_v32 }
 0x856   :  { %390 = vperm.xlu1 %1522, %v53_v33  }
 0x859   :  { %385 = vperm.xlu0 %1521, %v52_v36  }
 0x8d0   :  { %v1034_v39 = vpop.xlane.xlu0 %1033 }
 0x8d1   :  { %v1038_v40 = vmul.f32 0.03125, %v1034_v39 }
 0x8d2   :  { %v1037_v50 = vpop.xlane.xlu1 %1036 }
 0x8d3   :  { %v1040_v41 = vadd.f32 1e-05, %v1038_v40  ;;  %v1039_v42 = vmul.f32 0.03125, %v1037_v50 }
 0x8d5   :  { %1562 = vrsqrt.f32 %v1040_v41  ;;  %v1041_v44 = vadd.f32 1e-05, %v1039_v42 }
 0x8d6   :  { %v1941_v45 = vpop.permute.xlu1 %390 }
 0x8d7   :  { %1564 = vrsqrt.f32 %v1041_v44  ;;  %v394_v47 = vmul.f32 %v1941_v45, %v1794_v17  ;;  %v808_v48 = vmul.f32 %v1881_v46, %v1941_v45  ;;  %v1049_v17 = vrot.slane %v1910_v62, %v1750_v11  ;;  %v1543_v11 = vld [vmem:[%s2027_s10 + $0x10] sm:$0xff]   ;;  %s1621_s10 = smov [#allocation4]  }
 0x8d8   :  { %v1947_v49 = vpop.permute.xlu0 %385  ;;  %1507 = vmatpush3.bf16.msra.mxu1 %v1543_v11  ;;  %s1270_s4 = sshll.u32 %s1621_s10, 4  ;;  %s1271_s4 = int_to_ptr.vmem [resolvable:$true] %s1270_s4 }
 0x8d9   :  { %396 = vst.msk [vmem:[#allocation4 + $0x8] sm:$0xff] %vm360_vm4, %v394_v47  ;;  %811 = vst.msk [vmem:[#allocation4 + $0x18] sm:$0xff] %vm360_vm4, %v808_v48  ;;  %v393_v51 = vmul.f32 %v1947_v49, %v1801_v21  ;;  %v807_v52 = vmul.f32 %v1876_v43, %v1947_v49  ;;  %1508 = vmatprep.subr.bf16.mxu1 %v1618_v1  ;;  %v1138_v1 = vsub.s32 4, %v1747_v10  ;;  %s1570_s5 = scalar_lea.vmem %s1271_s4, 512  ;;  %p1575_p1 = scmp.lt.s32.totalorder %s1271_s4, %s1271_s4 }
 0x8da   :  { %p1571_p0 = scmp.ne.s32.totalorder %s1271_s4, %s1570_s5  ;;  %p1576_p2 = scmp.lt.s32.totalorder %s1570_s5, %s1570_s5 }
 0x8db   :  { %395 = vst.msk [vmem:[#allocation4] sm:$0xff] %vm360_vm4, %v393_v51  ;;  %810 = vst.msk [vmem:[#allocation4 + $0x10] sm:$0xff] %vm360_vm4, %v807_v52  ;;  %v1139_v13 = vrot.slane %v1910_v62, %v1138_v1 }
 0x8dc   :  { %1509 = vmatpush3.bf16.msra.mxu1 %v1544_v25  ;;  %p1577_p3 = por %p1576_p2, %p1575_p1 }
 0x8de   :  { %p1578_p4 = pnand %p1577_p3, %p1571_p0 }
 0x8df   :  { %v1563_v46 = vpop.eup %1562 }
 0x8e0   :  { %v1044_v54 = vmul.f32 %v1563_v46, %v1028_v26 }
 0x8e1   :  { %v1565_v55 = vpop.eup %1564 }
 0x8e2   :  { %v1045_v57 = vmul.f32 %v1565_v55, %v1029_v28  ;;  %v1050_v58 = vmul.f32 %v1049_v17, %v1044_v54 }
 0x8e4   :  { %v1051_v59 = vmul.f32 %v1049_v17, %v1045_v57  ;;  %v1056_v21 = vadd.f32 %v1055_v53, %v1050_v58 }
 0x8e6   :  { %v1057_v60 = vadd.f32 %v1055_v53, %v1051_v59  ;;  %v1058_v29 = vmul.f32 %v1056_v21, %v1947_v49 }
 0x8e8   :  { %v1059_v43 = vmul.f32 %v1057_v60, %v1941_v45 }
 0x8ea   :  { %v1060_v34 = vpack.c.bf16 %v1059_v43, %v1058_v29 }
 0x8ec   :  { %1499 = vmatmul.mubr.msk.bf16.vlgmr.msra.gmra.mrb[32].mxu0 %vm82_vm1, %v1060_v34 }
 0x9bf   :  { %v1118_v63 = vpop.f32.mrb[32].mxu0 }
 0x9c0   :  { %v1119_v0 = vadd.f32 %v1118_v63, %v1068_v61  ;;  %v1500_v2 = vpop.f32.mrb[33].mxu0 }
 0x9c1   :  { %v1121_v3 = vpop.f32.mrb[34].mxu0 }
 0x9c2   :  { %v1122_v5 = vadd.f32 %v1121_v3, %v1068_v61  ;;  %v1501_v7 = vpop.f32.mrb[35].mxu0  ;;  %v1125_v8 = vmax.f32 %v1119_v0, 0.0 }
 0x9c4   :  { %v1126_v9 = vmax.f32 %v1122_v5, 0.0 }
 0x9c6   :  { %v1127_v12 = vpack.c.bf16 %v1126_v9, %v1125_v8 }
 0x9c8   :  { %1511 = vmatmul.mubr.msk.bf16.vlgmr.msra.gmra.mrb[32].mxu1 %vm1164_vm5, %v1127_v12 }
 0xa9b   :  { %v1202_v15 = vpop.f32.mrb[32].mxu1 }
 0xa9c   :  { %v1203_v16 = vadd.f32 %v1202_v15, %v1139_v13  ;;  %v1512_v18 = vpop.f32.mrb[33].mxu1 }
 0xa9d   :  { %v1205_v19 = vpop.f32.mrb[34].mxu1 }
 0xa9e   :  { %v1206_v20 = vadd.f32 %v1205_v19, %v1139_v13  ;;  %v1513_v14 = vpop.f32.mrb[35].mxu1  ;;  %v1209_v22 = vadd.f32 %v1203_v16, %v1058_v29 }
 0xaa0   :  { %v1211_v23 = vsel %vm82_vm1, %v1209_v22, 0.0  ;;  %v1210_v24 = vadd.f32 %v1206_v20, %v1059_v43 }
 0xaa1   :  { %1212 = vadd.xlane.f32.xlu1 %v1211_v23 }
 0xaa2   :  { %v1214_v26 = vsel %vm82_vm1, %v1210_v24, 0.0 }
 0xaa3   :  { %1215 = vadd.xlane.f32.xlu0 %v1214_v26 }
 0xb2e   :  { %v1213_v27 = vpop.xlane.xlu1 %1212 }
 0xb2f   :  { %v1217_v28 = vmul.f32 0.03125, %v1213_v27 }
 0xb30   :  { %v1216_v30 = vpop.xlane.xlu0 %1215 }
 0xb31   :  { %v1219_v6 = vsub.f32 %v1209_v22, %v1217_v28  ;;  %v1218_v31 = vmul.f32 0.03125, %v1216_v30 }
 0xb33   :  { %v1220_v32 = vsub.f32 %v1210_v24, %v1218_v31  ;;  %v1221_v33 = vmul.f32 %v1219_v6, %v1219_v6 }
 0xb35   :  { %v1223_v36 = vsel %vm82_vm1, %v1221_v33, 0.0  ;;  %v1222_v4 = vmul.f32 %v1220_v32, %v1220_v32 }
 0xb36   :  { %1224 = vadd.xlane.f32.xlu1 %v1223_v36 }
 0xb37   :  { %v1226_v37 = vsel %vm82_vm1, %v1222_v4, 0.0 }
 0xb3a   :  { %1227 = vadd.xlane.f32.xlu1 %v1226_v37 }
 0xb3b   :  { %1581 = shalt.err (!%p1578_p4)
}
 0xb3c   :  { %s1582_s20 = scalar_lea.hbm %s2030_s13, 512 }
 0xb3d   :  { %p1583_p5 = scmp.ne.s32.totalorder %s2030_s13, %s1582_s20  ;;  %p1586_p6 = scmp.lt.u32.totalorder %s1582_s20, %s2030_s13 }
 0xb3f   :  { %p1588_p7 = pnand %p1586_p6, %p1583_p5 }
 0xb41   :  { %1591 = shalt.err (!%p1588_p7)
}
 0xb42   :  { %s1622_s22 = smov 128   ;;  %s1623_s7 = smov 8   ;;  %v1239_v42 = vsub.s32 5, %v1747_v10  ;;  %v1245_v44 = vsub.s32 6, %v1747_v10 }
 0xb43   :  { %1276 = dma.vmem_to_hbm [thread:$0]  %s1271_s4, 512, %s2030_s13, [#allocation5], %s1622_s22, %s1622_s22, %s1623_s7  }
 0xb44   :  { %v1240_v47 = vrot.slane %v1910_v62, %v1239_v42  ;;  %v1246_v52 = vrot.slane %v1910_v62, %v1245_v44  ;;  %s1624_s13 = smov [#allocation2]  }
 0xb45   :  { %s1258_s23 = sshll.u32 %s1624_s13, 4  ;;  %s1259_s23 = int_to_ptr.vmem [resolvable:$true] %s1258_s23 }
 0xb46   :  { %s1592_s24 = scalar_lea.vmem %s1259_s23, 256  ;;  %p1597_p9 = scmp.lt.s32.totalorder %s1259_s23, %s1259_s23 }
 0xb47   :  { %p1593_p8 = scmp.ne.s32.totalorder %s1259_s23, %s1592_s24  ;;  %p1598_p10 = scmp.lt.s32.totalorder %s1592_s24, %s1592_s24 }
 0xb49   :  { %p1599_p11 = por %p1598_p10, %p1597_p9 }
 0xb4b   :  { %p1600_p12 = pnand %p1599_p11, %p1593_p8 }
 0xbc3   :  { %v1225_v38 = vpop.xlane.xlu1 %1224 }
 0xbc4   :  { %v1229_v56 = vmul.f32 0.03125, %v1225_v38 }
 0xbc6   :  { %v1231_v39 = vadd.f32 1e-05, %v1229_v56 }
 0xbc7   :  { %v1228_v40 = vpop.xlane.xlu1 %1227 }
 0xbc8   :  { %1566 = vrsqrt.f32 %v1231_v39  ;;  %v1230_v50 = vmul.f32 0.03125, %v1228_v40 }
 0xbca   :  { %v1232_v41 = vadd.f32 1e-05, %v1230_v50 }
 0xbcc   :  { %1568 = vrsqrt.f32 %v1232_v41 }
 0xbd2   :  { %v1567_v48 = vpop.eup %1566 }
 0xbd3   :  { %v1235_v51 = vmul.f32 %v1567_v48, %v1219_v6 }
 0xbd5   :  { %v1241_v17 = vmul.f32 %v1240_v47, %v1235_v51 }
 0xbd6   :  { %v1569_v46 = vpop.eup %1568 }
 0xbd7   :  { %v1236_v53 = vmul.f32 %v1569_v46, %v1220_v32  ;;  %v1247_v54 = vadd.f32 %v1246_v52, %v1241_v17 }
 0xbd9   :  { %v1242_v55 = vmul.f32 %v1240_v47, %v1236_v53  ;;  %v1249_v57 = vmul.f32 %v1247_v54, %v1947_v49 }
 0xbdb   :  { %v1248_v58 = vadd.f32 %v1246_v52, %v1242_v55  ;;  %1251 = vst.msk [vmem:[#allocation2] sm:$0xff] %vm82_vm1, %v1249_v57 }
 0xbdd   :  { %v1250_v10 = vmul.f32 %v1248_v58, %v1941_v45 }
 0xbdf   :  { %1252 = vst.msk [vmem:[#allocation2 + $0x8] sm:$0xff] %vm82_vm1, %v1250_v10 }
 0xbe0   :  { %1603 = shalt.err (!%p1600_p12)
}
 0xbe1   :  { %s1604_s27 = scalar_lea.hbm %s2029_s12, 256 }
 0xbe2   :  { %p1605_p13 = scmp.ne.s32.totalorder %s2029_s12, %s1604_s27  ;;  %p1608_p0 = scmp.lt.u32.totalorder %s1604_s27, %s2029_s12 }
 0xbe4   :  { %p1610_p1 = pnand %p1608_p0, %p1605_p13 }
 0xbe6   :  { %1613 = shalt.err (!%p1610_p1)
}
 0xbe7   :  { %1264 = dma.vmem_to_hbm [thread:$0]  %s1259_s23, 256, %s2029_s12, [#allocation3], %s1622_s22, %s1622_s22, %s1623_s7  }
 0xbe8   :  { %1614 = dma.done.wait [#allocation3], 256  }
 0xbe9   :  { %1615 = vsyncadd [#allocation3], 4294967040 }
 0xbea   :  { %1616 = dma.done.wait [#allocation5], 512  }
 0xbeb   :  { %1617 = vsyncadd [#allocation5], 4294966784 }
 0xbec   :  { %1283 = vsyncpa [#allocation3], 1 }
 0xbed   :  { %1284 = vsyncpa [#allocation5], 1 }

</bundles_post_ra>
